<compile_context>
chip_gen: v7x
topology: tpu7x:2x2x1
jax: 0.10.0
libtpu: 0.0.40
codegen_flags: <defaults>
</compile_context>

<pallas_src>
import functools
import math

import jax
import jax.numpy as jnp
from jax.experimental import pallas as pl
from jax.experimental.pallas import tpu as pltpu


def _round_up(x, m):
    return ((x + m - 1) // m) * m


# --------------------------------------------------------------------------
# Kernels
# --------------------------------------------------------------------------
def _conv1d_kernel_resident(x_ref, w_ref, b_ref, o_ref):
    """Whole-K-resident tile: one matmul + bias, no accumulator scratch."""
    acc = jnp.dot(x_ref[...], w_ref[...], preferred_element_type=jnp.float32)
    o_ref[...] = (acc + b_ref[...].astype(jnp.float32)).astype(o_ref.dtype)


def _conv1d_kernel_ktiled_accout(x_ref, w_ref, b_ref, o_ref):
    """K-tiled, fp32 output: accumulate straight into the output block
    (the output block is resident across the K grid axis), bias in init."""
    @pl.when(pl.program_id(2) == 0)
    def _():
        o_ref[...] = jnp.broadcast_to(
            b_ref[...].astype(o_ref.dtype), o_ref.shape
        )

    o_ref[...] += jnp.dot(
        x_ref[...], w_ref[...], preferred_element_type=jnp.float32
    )


def _conv1d_kernel_ktiled_scratch(x_ref, w_ref, b_ref, o_ref, acc_ref):
    """K-tiled, non-fp32 output: fp32 scratch accumulator, bias in init."""
    @pl.when(pl.program_id(2) == 0)
    def _():
        acc_ref[...] = jnp.broadcast_to(
            b_ref[...].astype(jnp.float32), acc_ref.shape
        )

    acc_ref[...] += jnp.dot(
        x_ref[...], w_ref[...], preferred_element_type=jnp.float32
    )

    @pl.when(pl.program_id(2) == pl.num_programs(2) - 1)
    def _():
        o_ref[...] = acc_ref[...].astype(o_ref.dtype)


# --------------------------------------------------------------------------
# Generation-aware VMEM budgeting
# --------------------------------------------------------------------------
def _vmem_capacity_bytes():
    try:
        info = pltpu.get_tpu_info()
        for attr in ("vmem_capacity_bytes", "vmem_size_bytes", "vmem_bytes"):
            v = getattr(info, attr, None)
            if v:
                return int(v)
    except Exception:
        pass
    try:
        kind = jax.devices()[0].device_kind.lower()
        if any(t in kind for t in ("v4", "v5", "v6", "trillium")):
            return 128 << 20
    except Exception:
        pass
    return 64 << 20  # conservative (v7x-sized)


@functools.lru_cache(maxsize=None)
def _vmem_plan():
    """Returns (default_budget, scoped_vmem_clamp)."""
    cap = _vmem_capacity_bytes()
    if cap >= (128 << 20):          # v4 / v5e / v5p / v6e: 128 MiB VMEM
        return 90 << 20, 100 << 20
    return 38 << 20, 48 << 20       # v7x: 64 MiB physical, leave headroom


# --------------------------------------------------------------------------
# Tile selection (HBM-traffic cost model, footprint-gated)
# --------------------------------------------------------------------------
_TILE_CANDIDATES = (1024, 768, 512, 384, 256, 128)


def _tm_options(m):
    m8 = _round_up(m, 8)
    return sorted({min(t, m8) for t in _TILE_CANDIDATES}, reverse=True)


def _tn_options(nf):
    n128 = _round_up(nf, 128)
    return sorted({min(t, n128) for t in _TILE_CANDIDATES}, reverse=True)


def _tk_options(nx):
    k128 = _round_up(nx, 128)
    return sorted({min(t, k128) for t in _TILE_CANDIDATES}, reverse=True)


def _pick_tiles(m, nx, nf, in_bytes, out_bytes, budget, fp32_out):
    """Returns (mode, tm, tn, tk, x_resident, footprint_bytes).

    mode == "resident": no K grid axis; tk is None.
    mode == "ktiled":   K is tiled with tk; fp32 outputs accumulate in-place.
    """
    tm_opts = _tm_options(m)
    tn_opts = _tn_options(nf)

    # ---- Whole-K-resident fast path (no K axis, no accumulator) ----------
    cands = []
    for tm in tm_opts:
        for tn in tn_opts:
            fp = ((2 * tm * nx + 2 * nx * tn) * in_bytes
                  + 2 * tm * tn * out_bytes
                  + 2 * tn * 4)
            if fp > budget:
                continue
            mp, npad = _round_up(m, tm), _round_up(nf, tn)
            x_sz = mp * nx * in_bytes
            w_sz = nx * npad * in_bytes
            # W-resident: weight read once, x streamed npad/tn times.
            cost_w_res = (npad // tn) * x_sz + w_sz
            # x-resident: x read once, weight streamed mp/tm times.
            cost_x_res = x_sz + (mp // tm) * w_sz
            x_res = cost_x_res < cost_w_res
            cost = min(cost_x_res, cost_w_res) + mp * npad * out_bytes
            waste = mp * npad - m * nf      # padded flops as a tie-breaker
            cands.append((cost, waste, -(tm * tn), tm, tn, bool(x_res), fp))
    if cands:
        cands.sort()
        _, _, _, tm, tn, x_res, fp = cands[0]
        return "resident", tm, tn, None, x_res, fp

    # ---- K-tiled fallback -------------------------------------------------
    tk_opts = _tk_options(nx)
    acc_bytes = 0 if fp32_out else 4        # scratch only for non-fp32 outs

    def ktiled_fp(tm, tn, tk):
        return ((2 * tm * tk + 2 * tk * tn) * in_bytes
                + 2 * tm * tn * out_bytes
                + 2 * tn * 4
                + tm * tn * acc_bytes)

    pairs = []
    for tm in tm_opts:
        for tn in tn_opts:
            mp, npad = _round_up(m, tm), _round_up(nf, tn)
            kpad = _round_up(nx, tk_opts[-1])
            x_sz = mp * kpad * in_bytes
            w_sz = kpad * npad * in_bytes
            cost = ((npad // tn) * x_sz + (mp // tm) * w_sz
                    + mp * npad * out_bytes)
            pairs.append((cost, -(tm * tn), tm, tn))
    pairs.sort()

    for _, _, tm, tn in pairs:
        for tk in tk_opts:
            fp = ktiled_fp(tm, tn, tk)
            if fp <= budget:
                return "ktiled", tm, tn, tk, False, fp

    # ---- Last resort: minimum tiles, shrink tm until the plan fits --------
    tm, tn, tk = tm_opts[-1], tn_opts[-1], tk_opts[-1]
    while ktiled_fp(tm, tn, tk) > budget and tm > 8:
        tm = max(8, _round_up(tm // 2, 8))
    return "ktiled", tm, tn, tk, False, ktiled_fp(tm, tn, tk)


# --------------------------------------------------------------------------
# Wrapper
# --------------------------------------------------------------------------
@functools.partial(
    jax.jit, static_argnames=("compute_dtype", "vmem_budget_bytes")
)
def conv1d(x, weight, bias, *, compute_dtype=None, vmem_budget_bytes=None):
    """y = x @ weight + bias  (torch.addmm semantics of Conv1D.forward).

    x:      (..., nx)
    weight: (nx, nf)
    bias:   (nf,)
    returns (..., nf), dtype of x.

    compute_dtype=jnp.bfloat16 is the fast path on bf16-native MXUs
    (bf16 operands, fp32 accumulation; operand-rounding level precision loss).
    """
    nx, nf = weight.shape
    lead = x.shape[:-1]
    m = math.prod(lead) if lead else 1
    m = max(m, 1)

    out_dtype = jnp.dtype(x.dtype)
    cdt = jnp.dtype(compute_dtype) if compute_dtype is not None else out_dtype
    in_bytes = cdt.itemsize
    out_bytes = out_dtype.itemsize
    fp32_out = out_dtype == jnp.dtype(jnp.float32)

    hw_budget, hw_clamp = _vmem_plan()
    budget = hw_budget if vmem_budget_bytes is None else int(vmem_budget_bytes)
    budget = max(1, min(budget, hw_clamp - (8 << 20)))

    mode, tm, tn, tk, x_res, fp = _pick_tiles(
        m, nx, nf, in_bytes, out_bytes, budget, fp32_out
    )

    mp = _round_up(m, tm)
    npad = _round_up(nf, tn)
    kpad = nx if tk is None else _round_up(nx, tk)

    # Cast (if requested) and pad in a single fused pass per operand.
    x2 = x.reshape(m, nx)
    if x2.dtype != cdt:
        x2 = x2.astype(cdt)
    if (mp, kpad) != (m, nx):
        x2 = jnp.pad(x2, ((0, mp - m), (0, kpad - nx)))

    w2 = weight
    if w2.dtype != cdt:
        w2 = w2.astype(cdt)
    if (kpad, npad) != (nx, nf):
        w2 = jnp.pad(w2, ((0, kpad - nx), (0, npad - nf)))

    b2 = bias.astype(jnp.float32).reshape(1, nf)
    if npad != nf:
        b2 = jnp.pad(b2, ((0, 0), (0, npad - nf)))

    vmem_limit = int(min(max(fp + (8 << 20), 32 << 20), hw_clamp))

    if mode == "resident":
        if x_res:
            # x row-block resident, weight column-blocks stream (N innermost).
            grid = (mp // tm, npad // tn)
            x_map = lambda i, j: (i, 0)
            w_map = lambda i, j: (0, j)
            b_map = lambda i, j: (0, j)
            o_map = lambda i, j: (i, j)
        else:
            # weight column-block resident, x row-blocks stream (M innermost).
            grid = (npad // tn, mp // tm)
            x_map = lambda j, i: (i, 0)
            w_map = lambda j, i: (0, j)
            b_map = lambda j, i: (0, j)
            o_map = lambda j, i: (i, j)
        out = pl.pallas_call(
            _conv1d_kernel_resident,
            out_shape=jax.ShapeDtypeStruct((mp, npad), out_dtype),
            grid_spec=pltpu.PrefetchScalarGridSpec(
                num_scalar_prefetch=0,
                grid=grid,
                in_specs=[
                    pl.BlockSpec((tm, kpad), x_map),   # x (whole K)
                    pl.BlockSpec((kpad, tn), w_map),   # W (whole K)
                    pl.BlockSpec((1, tn), b_map),      # bias
                ],
                out_specs=pl.BlockSpec((tm, tn), o_map),
            ),
            compiler_params=pltpu.CompilerParams(
                # Only the OUTER axis is parallel: on multi-TensorCore parts
                # (v7x megacore) each core gets disjoint blocks of the
                # resident operand, so no HBM reads are duplicated. Sharding
                # the inner axis would make both cores re-read the resident
                # operand.
                dimension_semantics=("parallel", "arbitrary"),
                vmem_limit_bytes=vmem_limit,
            ),
        )(x2, w2, b2)
    else:
        grid = (mp // tm, npad // tn, kpad // tk)
        if fp32_out:
            kernel = _conv1d_kernel_ktiled_accout
            scratch = []
        else:
            kernel = _conv1d_kernel_ktiled_scratch
            scratch = [pltpu.VMEM((tm, tn), jnp.float32)]
        out = pl.pallas_call(
            kernel,
            out_shape=jax.ShapeDtypeStruct((mp, npad), out_dtype),
            grid_spec=pltpu.PrefetchScalarGridSpec(
                num_scalar_prefetch=0,
                grid=grid,
                in_specs=[
                    pl.BlockSpec((tm, tk), lambda i, j, k: (i, k)),  # x
                    pl.BlockSpec((tk, tn), lambda i, j, k: (k, j)),  # W
                    pl.BlockSpec((1, tn), lambda i, j, k: (0, j)),   # bias
                ],
                out_specs=pl.BlockSpec((tm, tn), lambda i, j, k: (i, j)),
                scratch_shapes=scratch,
            ),
            compiler_params=pltpu.CompilerParams(
                dimension_semantics=("parallel", "parallel", "arbitrary"),
                vmem_limit_bytes=vmem_limit,
            ),
        )(x2, w2, b2)

    if (mp, npad) != (m, nf):
        out = out[:m, :nf]
    return out.reshape(*lead, nf)


# --------------------------------------------------------------------------
# Test
# --------------------------------------------------------------------------
if __name__ == "__main__":
    key = jax.random.PRNGKey(0)
    kx, kw, kx2, kw2, kx3, kw3 = jax.random.split(key, 6)

    # --- Small shape consistent with the module (resident fast path, fp32).
    batch, seq, nx, nf = 2, 8, 32, 64
    x = jax.random.normal(kx, (batch, seq, nx), dtype=jnp.float32)
    weight = 0.02 * jax.random.normal(kw, (nx, nf), dtype=jnp.float32)
    bias = jnp.zeros((nf,), dtype=jnp.float32)

    y = conv1d(x, weight, bias)
    jax.block_until_ready(y)
    y_ref = (x.reshape(-1, nx) @ weight + bias).reshape(batch, seq, nf)
    assert y.shape == (batch, seq, nf)
    assert jnp.allclose(y, y_ref, atol=1e-5, rtol=1e-5)

    # --- Tiny VMEM budget forces the K-tiled fallback (fp32 in-place acc).
    b2, s2, nx2, nf2 = 2, 32, 256, 256
    x2 = jax.random.normal(kx2, (b2, s2, nx2), dtype=jnp.float32)
    w2 = 0.02 * jax.random.normal(kw2, (nx2, nf2), dtype=jnp.float32)
    bias2 = 0.1 * jnp.arange(nf2, dtype=jnp.float32)

    y2 = conv1d(x2, w2, bias2, vmem_budget_bytes=128 * 1024)
    jax.block_until_ready(y2)
    y2_ref = (x2.reshape(-1, nx2) @ w2 + bias2).reshape(b2, s2, nf2)
    assert y2.shape == (b2, s2, nf2)
    assert jnp.allclose(y2, y2_ref, atol=1e-4, rtol=1e-4)

    # --- bf16-compute fast path (fp32 accumulation), looser tolerance.
    b3, s3, nx3, nf3 = 2, 16, 128, 192
    x3 = jax.random.normal(kx3, (b3, s3, nx3), dtype=jnp.float32)
    w3 = 0.02 * jax.random.normal(kw3, (nx3, nf3), dtype=jnp.float32)
    bias3 = 0.05 * jnp.arange(nf3, dtype=jnp.float32)

    y3 = conv1d(x3, w3, bias3, compute_dtype=jnp.bfloat16)
    jax.block_until_ready(y3)
    y3_ref = (x3.reshape(-1, nx3) @ w3 + bias3).reshape(b3, s3, nf3)
    assert y3.shape == (b3, s3, nf3)
    assert jnp.allclose(y3, y3_ref, atol=3e-2, rtol=3e-2)

    print("KERNEL_OK")
</pallas_src>

<mosaic_0001>
module attributes {stable_mosaic.version = 11 : i64} {
  func.func @_conv1d_kernel_resident(%arg0: i32, %arg1: i32, %arg2: memref<16x32xf32, #tpu.memory_space<vmem>>, %arg3: memref<32x128xf32, #tpu.memory_space<vmem>>, %arg4: memref<1x128xf32, #tpu.memory_space<vmem>>, %arg5: memref<16x128xf32, #tpu.memory_space<vmem>>) attributes {dimension_semantics = [#tpu.dimension_semantics<parallel>, #tpu.dimension_semantics<arbitrary>], iteration_bounds = array<i64: 1, 1>, scalar_prefetch = 0 : i64, scratch_operands = 0 : i64, tpu.core_type = #tpu.core_type<tc>, window_params = [{transform_indices = @transform_0, window_bounds = array<i64: 16, 32>}, {transform_indices = @transform_1, window_bounds = array<i64: 32, 128>}, {transform_indices = @transform_2, window_bounds = array<i64: 1, 128>}, {transform_indices = @transform_3, window_bounds = array<i64: 16, 128>}]} {
    %c0 = arith.constant 0 : index
    %c0_0 = arith.constant 0 : index
    %0 = vector.load %arg2[%c0, %c0_0] : memref<16x32xf32, #tpu.memory_space<vmem>>, vector<16x32xf32>
    %c0_1 = arith.constant 0 : index
    %c0_2 = arith.constant 0 : index
    %1 = vector.load %arg3[%c0_1, %c0_2] : memref<32x128xf32, #tpu.memory_space<vmem>>, vector<32x128xf32>
    %cst = arith.constant dense<0.000000e+00> : vector<16x128xf32>
    %2 = tpu.matmul %0, %1, %cst {dimension_numbers = #tpu.dot_dimension_numbers<[1], [0], [0], [1], [0, 0, 1, 1], [], []>} : vector<16x32xf32>, vector<32x128xf32>, vector<16x128xf32> -> vector<16x128xf32>
    %c0_3 = arith.constant 0 : index
    %c0_4 = arith.constant 0 : index
    %3 = vector.load %arg4[%c0_3, %c0_4] : memref<1x128xf32, #tpu.memory_space<vmem>>, vector<1x128xf32>
    %4 = vector.broadcast %3 : vector<1x128xf32> to vector<16x128xf32>
    %5 = arith.addf %2, %4 : vector<16x128xf32>
    %c0_5 = arith.constant 0 : index
    %c0_6 = arith.constant 0 : index
    %6 = vector.load %arg5[%c0_5, %c0_6] : memref<16x128xf32, #tpu.memory_space<vmem>>, vector<16x128xf32>
    tpu.vector_store %arg5[%c0_5, %c0_6], %5 {strides = array<i32>} : memref<16x128xf32, #tpu.memory_space<vmem>>, vector<16x128xf32>,
    return
  }
  func.func @transform_0(%arg0: i32, %arg1: i32) -> (i32, i32) {
    %c0_i32 = arith.constant 0 : i32
    %c0_i32_0 = arith.constant 0 : i32
    return %arg1, %c0_i32 : i32, i32
  }
  func.func @transform_1(%arg0: i32, %arg1: i32) -> (i32, i32) {
    %c0_i32 = arith.constant 0 : i32
    %c0_i32_0 = arith.constant 0 : i32
    return %c0_i32, %arg0 : i32, i32
  }
  func.func @transform_2(%arg0: i32, %arg1: i32) -> (i32, i32) {
    %c0_i32 = arith.constant 0 : i32
    %c0_i32_0 = arith.constant 0 : i32
    return %c0_i32, %arg0 : i32, i32
  }
  func.func @transform_3(%arg0: i32, %arg1: i32) -> (i32, i32) {
    %c0_i32 = arith.constant 0 : i32
    return %arg1, %arg0 : i32, i32
  }
}

</mosaic_0001>

<bundles_post_ra>
// kernel: conv1d.1
= control target key start
LH: loop header
LB: loop body
LE: loop exit
PB: predicated region body
PF: predicated region fallthrough
CT: control target
= control target key end

     0   :  { %vm27_vm0 = vcmask 261120   ;;  %s190_s1 = inlined_call_operand.vmem [shape: f32[32,128], index: 1, kind: input, shape index: {}]   ;;  %s191_s0 = inlined_call_operand.vmem [shape: f32[16,32], index: 0, kind: input, shape index: {}]   ;;  %s192_s2 = inlined_call_operand.vmem [shape: f32[1,128], index: 2, kind: input, shape index: {}]   ;;  %s193_s3 = inlined_call_operand.vmem [shape: f32[16,128], index: 3, kind: output, shape index: {}]  }
   0x1   :  { %v16_v0 = vld [vmem:[%s190_s1] sm:$0xff]  ;;  %v17_v1 = vld [vmem:[%s190_s1 + $0x8] sm:$0xff]  ;;  %v18_v2 = vld [vmem:[%s190_s1 + $0x10] sm:$0xff] }
   0x2   :  { %v135_v3 = vpack.c.bf16 %v17_v1, %v16_v0  ;;  %v19_v4 = vld [vmem:[%s190_s1 + $0x18] sm:$0xff]  ;;  %v14_v5 = vld [vmem:[%s191_s0] sm:$0xff]  ;;  %v15_v7 = vld [vmem:[%s191_s0 + $0x8] sm:$0xff] }
   0x3   :  { %v139_v6 = vpack.c.bf16 %v19_v4, %v18_v2  ;;  %132 = vmatprep.mubr.msk.f32.mxu0 %vm27_vm0, %v14_v5  ;;  %v115_v8 = vld [vmem:[%s192_s2] ss:$0 sm:$0xff] }
   0x4   :  { %136 = vmatprep.subr.bf16.mxu0 %v135_v3 }
   0x5   :  { %138 = vmatpush3.bf16.msra.mxu0 %v135_v3 }
   0x6   :  { %140 = vmatprep.subr.bf16.mxu0 %v139_v6 }
   0x9   :  { %142 = vmatpush3.bf16.msra.mxu0 %v139_v6 }
   0xc   :  { %133 = vmatmul.mubr.msk.f32.vlgmr.msra.gmra.mrb[0].mxu0 %vm27_vm0, %v15_v7 }
  0xdf   :  { %v134_v9 = vpop.f32.mrb[0].mxu0 }
  0xe0   :  { %v106_v10 = vadd.f32 %v134_v9, %v115_v8  ;;  %v100_v11 = vpop.f32.mrb[1].mxu0 }
  0xe1   :  { %v101_v12 = vadd.f32 %v115_v8, %v100_v11 }
  0xe2   :  { %110 = vst [vmem:[%s193_s3 + $0x8] sm:$0xff] %v106_v10 }
  0xe3   :  { %109 = vst [vmem:[%s193_s3] sm:$0xff] %v101_v12 }

</bundles_post_ra>
